<compile_context>
chip_gen: v6e
topology: v6e:2x2x1
jax: 0.10.0
libtpu: 0.0.40
codegen_flags: <defaults>
</compile_context>

<pallas_src>
import functools

import jax
import jax.numpy as jnp
import numpy as np
from jax.experimental import pallas as pl
from jax.experimental.pallas import tpu as pltpu


# ----------------------------------------------------------------------------
# Mask construction (mirrors the PyTorch create_masks / checkerboard mask)
# ----------------------------------------------------------------------------
def create_checkerboard_mask(size: int, zero_diag: bool) -> jnp.ndarray:
    ii = jnp.arange(size)[:, None]
    jj = jnp.arange(size)[None, :]
    cb = ((ii + jj) % 2).astype(jnp.float32)      # diagonal (i == j) entries are 0
    return cb if zero_diag else (1.0 - cb)


def create_masks(input_size, channels):
    masks = []
    current_size = input_size
    for i, (prev_c, curr_c) in enumerate(zip(channels[:-1], channels[1:])):
        if prev_c < curr_c:
            current_size = int(current_size // 2)
        elif prev_c > curr_c:
            current_size = int(current_size * 2)
        m = create_checkerboard_mask(current_size, zero_diag=(i % 2 == 0))
        m = jnp.broadcast_to(m[None, :, :], (curr_c, current_size, current_size))
        masks.append(m.astype(jnp.float32))
    return masks


# ----------------------------------------------------------------------------
# One-time probe of pltpu.roll's rotation direction (run once per process).
# True  -> out[i] == x[(i - shift) % n]  (jnp.roll convention)
# False -> out[i] == x[(i + shift) % n]
# ----------------------------------------------------------------------------
@functools.lru_cache(maxsize=None)
def _roll_matches_jnp_roll() -> bool:
    def kernel(x_ref, o_ref):
        o_ref[...] = pltpu.roll(x_ref[...], 1, 1)

    x = jnp.broadcast_to(jnp.arange(256, dtype=jnp.float32)[None, :], (8, 256))
    y = pl.pallas_call(
        kernel, out_shape=jax.ShapeDtypeStruct((8, 256), jnp.float32))(x)
    return bool(np.asarray(jax.device_get(y))[0, 1] == 0.0)


# ----------------------------------------------------------------------------
# Fused Pallas kernel: all RevLayers in one invocation, per whole-image tile.
# Per layer:   y = x*m + (1-m) * ( x * exp(s(x*m)) + t(x*m) )
# with s, t single 3x3 SAME convs done as im2col + one MXU matmul.
# ----------------------------------------------------------------------------
def _revnet_fused_kernel(x_ref, cb_ref, vp_ref, w_ref, o_ref, patches_ref,
                         *, num_layers, shifts):
    # x_ref:       (8, Mt)    activation, channel rows duplicated
    #                          (rows 0..3 == rows 4..7), m = img*H*W + h*W + w
    # cb_ref:      (L, Mt)    per-layer flat checkerboard mask (one tile's worth)
    # vp_ref:      (40, Mt)   layer-independent SAME-validity mask, pre-paired:
    #                          rows 4k..4k+3 = tap-k validity, row 36 = 1 (bias),
    #                          rows 37..39 = 0
    # w_ref:       (L, 16, 40) [ws; ws; wt; wt] row-duplicated weights,
    #                          conv bias folded into column 36
    # o_ref:       (8, Mt)    output (duplicated rows; wrapper keeps rows 0..3)
    # patches_ref: (40, Mt)   im2col scratch (fully rewritten every layer)
    mt = x_ref.shape[1]

    # Sublane selector: rows 0..3 hold tap 2p, rows 4..7 hold tap 2p+1.
    rowsel = jax.lax.broadcasted_iota(jnp.int32, (8, mt), 0) < 4

    # Layer-independent validity blocks stay register-resident across layers.
    vp = [vp_ref[pl.ds(8 * p, 8), :] for p in range(5)]

    act = x_ref[...]                                          # (8, Mt) f32

    for l in range(num_layers):
        m = cb_ref[pl.ds(l, 1), :]                            # (1, Mt)
        xm = act * m                                          # pre-masked input

        def tap(k):
            s = shifts[k]
            # XLU lane rotate; wrapped (cross-image / out-of-image) elements
            # are zeroed by the validity blocks below.
            return xm if s == 0 else pltpu.roll(xm, s, 1)

        # im2col: 4 paired taps + (tap 8 | bias-ones | zero pad) -> five
        # aligned, unmasked 8-sublane stores per layer.
        for p in range(4):
            blk = jnp.where(rowsel, tap(2 * p), tap(2 * p + 1))
            patches_ref[pl.ds(8 * p, 8), :] = blk * vp[p]
        blk = jnp.where(rowsel, tap(8), 1.0)
        patches_ref[pl.ds(32, 8), :] = blk * vp[4]

        # One MXU matmul per layer: (16, 40) @ (40, Mt) -> (16, Mt).
        # Rows 0..7 are the scale net s (duplicated), rows 8..15 the shift t —
        # both slices are full sublane tiles, no mid-tile repacking.
        st = jnp.dot(w_ref[l], patches_ref[...],
                     preferred_element_type=jnp.float32)
        s = st[:8, :]
        t = st[8:, :]

        act = act * m + (1.0 - m) * (act * jnp.exp(s) + t)

    # Single contiguous, lane-dense store.
    o_ref[...] = act.astype(o_ref.dtype)


# ----------------------------------------------------------------------------
# Constant prep (done ONCE in the builder, outside the per-call jit path).
# ----------------------------------------------------------------------------
def _choose_images_per_tile(batch, hw):
    """Smallest whole-image tile whose flat (lane) length is a multiple of 128
    and divides the batch; falls back to the whole batch (a block equal to the
    full array is exempt from the 128-lane rule)."""
    for ipt in range(1, batch + 1):
        if batch % ipt == 0 and (ipt * hw) % 128 == 0:
            return ipt
    return batch


def _validity_pairs_np(H, W):
    """(40, H*W) layer-independent SAME-conv validity mask, pre-paired for C=4."""
    hw = H * W
    h_i = np.arange(hw) // W
    w_i = np.arange(hw) % W
    vp = np.zeros((40, hw), np.float32)
    for k in range(9):
        dy, dx = k // 3, k % 3
        hh, ww = h_i + dy - 1, w_i + dx - 1
        valid = ((hh >= 0) & (hh < H) & (ww >= 0) & (ww < W)).astype(np.float32)
        vp[4 * k:4 * k + 4, :] = valid[None, :]
    vp[36, :] = 1.0                     # constant ones row folds the conv bias
    return vp


def _flatten_weights(params, C):
    """(L, 16, 40) weight tiles: rows [ws; ws; wt; wt], bias in column 36.

    Column index = (dy*3 + dx)*C + c, matching the paired im2col row layout
    (tap k, channel c lands in patches row 4k + c)."""
    K = 9 * C
    zpad = jnp.zeros((C, 40 - K - 1), jnp.float32)
    tiles = []
    for ws, bs, wt, bt in params:
        ws_f = jnp.transpose(ws, (0, 2, 3, 1)).reshape(C, K)
        wt_f = jnp.transpose(wt, (0, 2, 3, 1)).reshape(C, K)
        s_rows = jnp.concatenate([ws_f, bs[:, None], zpad], axis=1)   # (C, 40)
        t_rows = jnp.concatenate([wt_f, bt[:, None], zpad], axis=1)   # (C, 40)
        tiles.append(jnp.concatenate([s_rows, s_rows, t_rows, t_rows], axis=0))
    return jnp.stack(tiles).astype(jnp.float32)


def make_revnet_forward(input_size, channels, params):
    """Builds a jitted forward(x); all mask/weight constants are computed here
    once (no per-call XLA gathers)."""
    masks = create_masks(input_size, channels)
    C, H, W = (int(d) for d in masks[0].shape)
    L = len(masks)
    # TODO(synk): kernel is specialized for C == 4 (2*C = 8 sublanes pairing).
    assert C == 4, "fused kernel is specialized for 4 channels"
    for m in masks:
        assert m.shape == (C, H, W), (
            "fused kernel assumes constant channels / spatial size across layers")
    assert len(params) == L

    hw = H * W
    # Per-image constants (numpy, once): per-layer checkerboard + tap validity.
    cb_img = np.stack(
        [np.asarray(jax.device_get(m))[0].reshape(hw) for m in masks]
    ).astype(np.float32)                                   # (L, HW)
    vp_img = _validity_pairs_np(H, W)                      # (40, HW)
    w_cat = _flatten_weights(params, C)                    # (L, 16, 40)

    roll_fwd = _roll_matches_jnp_roll()
    flat_offsets = [(dy - 1) * W + (dx - 1) for dy in range(3) for dx in range(3)]

    @jax.jit
    def forward(x):
        N, Cx, Hx, Wx = x.shape
        assert (Cx, Hx, Wx) == (C, H, W)
        M = N * hw

        ipt = _choose_images_per_tile(N, hw)               # whole-image tiles
        Mt = ipt * hw
        num_tiles = M // Mt
        # TODO(synk): at large N*H*W, grow ipt toward a per-generation VMEM
        # budget (v7x: 64 MiB physical / 32 MiB default scoped; v5e: 16 MiB
        # default scoped) instead of the minimal lane-aligned tile.

        # Tap roll amounts (non-negative), adapted to pltpu.roll's direction.
        shifts = tuple(((-s) % Mt) if roll_fwd else (s % Mt) for s in flat_offsets)

        # Trace-time constants, tiled to one grid tile (tiles hold whole images
        # so the same pattern applies to every tile).
        cb = jnp.asarray(np.tile(cb_img, (1, ipt)))        # (L, Mt)
        vp = jnp.asarray(np.tile(vp_img, (1, ipt)))        # (40, Mt)

        # Lane-dense layout (C, N*H*W); channel rows duplicated to 8 sublanes.
        x2d = jnp.transpose(x, (1, 0, 2, 3)).reshape(C, M).astype(jnp.float32)
        x_dup = jnp.concatenate([x2d, x2d], axis=0)        # (8, M)

        kernel = functools.partial(
            _revnet_fused_kernel, num_layers=L, shifts=shifts)

        out2d = pl.pallas_call(
            kernel,
            out_shape=jax.ShapeDtypeStruct((8, M), jnp.float32),
            grid_spec=pltpu.PrefetchScalarGridSpec(
                num_scalar_prefetch=0,
                grid=(num_tiles,),
                in_specs=[
                    pl.BlockSpec((8, Mt), lambda i: (0, i)),         # activation
                    pl.BlockSpec((L, Mt), lambda i: (0, 0)),         # checkerboard
                    pl.BlockSpec((40, Mt), lambda i: (0, 0)),        # validity
                    pl.BlockSpec((L, 16, 40), lambda i: (0, 0, 0)),  # weights
                ],
                out_specs=pl.BlockSpec((8, Mt), lambda i: (0, i)),
                scratch_shapes=[pltpu.VMEM((40, Mt), jnp.float32)],  # im2col
            ),
            compiler_params=pltpu.CompilerParams(
                dimension_semantics=("parallel",)),
        )(x_dup, cb, vp, w_cat)

        out = out2d[:C].reshape(C, N, H, W)
        return jnp.transpose(out, (1, 0, 2, 3)).astype(x.dtype)

    return forward


# ----------------------------------------------------------------------------
# Pure-JAX reference (for correctness check)
# ----------------------------------------------------------------------------
def ref_layer(x, mask, ws, bs, wt, bt):
    xm = x * mask[None]
    dn = jax.lax.conv_dimension_numbers(x.shape, ws.shape, ("NCHW", "OIHW", "NCHW"))
    conv = lambda inp, w: jax.lax.conv_general_dilated(
        inp, w, (1, 1), "SAME", dimension_numbers=dn,
        precision=jax.lax.Precision.HIGHEST)
    s = conv(xm, ws) + bs[None, :, None, None]
    t = conv(xm, wt) + bt[None, :, None, None]
    return xm + (1.0 - mask[None]) * (x * jnp.exp(s) + t)


def ref_forward(x, masks, params):
    out = x
    for mask, (ws, bs, wt, bt) in zip(masks, params):
        out = ref_layer(out, mask, ws, bs, wt, bt)
    return out


if __name__ == "__main__":
    input_size = 16
    channels = [4, 4, 4]          # constant channels -> masks stay at input_size
    N = 2

    masks = create_masks(input_size, channels)

    key = jax.random.PRNGKey(0)
    params = []
    for m in masks:
        C = m.shape[0]
        key, k1, k2, k3, k4 = jax.random.split(key, 5)
        ws = 0.1 * jax.random.normal(k1, (C, C, 3, 3), jnp.float32)
        wt = 0.1 * jax.random.normal(k2, (C, C, 3, 3), jnp.float32)
        bs = 0.1 * jax.random.normal(k3, (C,), jnp.float32)
        bt = 0.1 * jax.random.normal(k4, (C,), jnp.float32)
        params.append((ws, bs, wt, bt))

    key, kx = jax.random.split(key)
    x = jax.random.normal(kx, (N, channels[0], input_size, input_size), jnp.float32)

    fwd = make_revnet_forward(input_size, channels, params)
    out = jax.block_until_ready(fwd(x))

    ref = jax.block_until_ready(ref_forward(x, masks, params))
    np.testing.assert_allclose(np.asarray(out), np.asarray(ref), atol=1e-3, rtol=1e-3)

    print("KERNEL_OK")
</pallas_src>

<mosaic_0001>
module attributes {stable_mosaic.version = 11 : i64} {
  func.func @kernel(%arg0: memref<8x256xf32, #tpu.memory_space<vmem>>, %arg1: memref<8x256xf32, #tpu.memory_space<vmem>>) attributes {dimension_semantics = [], scalar_prefetch = 0 : i64, scratch_operands = 0 : i64, tpu.core_type = #tpu.core_type<tc>} {
    %c0 = arith.constant 0 : index
    %c0_0 = arith.constant 0 : index
    %0 = vector.load %arg0[%c0, %c0_0] : memref<8x256xf32, #tpu.memory_space<vmem>>, vector<8x256xf32>
    %c1_i32 = arith.constant 1 : i32
    %1 = tpu.dynamic_rotate %0 by %c1_i32 dim 1 : vector<8x256xf32>, i32 -> vector<8x256xf32>
    %c0_1 = arith.constant 0 : index
    %c0_2 = arith.constant 0 : index
    %2 = vector.load %arg1[%c0_1, %c0_2] : memref<8x256xf32, #tpu.memory_space<vmem>>, vector<8x256xf32>
    tpu.vector_store %arg1[%c0_1, %c0_2], %1 {strides = array<i32>} : memref<8x256xf32, #tpu.memory_space<vmem>>, vector<8x256xf32>,
    return
  }
}

</mosaic_0001>

<bundles_post_ra>
// kernel: tpu_custom_call.1
= control target key start
LH: loop header
LB: loop body
LE: loop exit
PB: predicated region body
PF: predicated region fallthrough
CT: control target
= control target key end

     0   :  { %6 = vsyncpa [#allocation3], 0  ;;  %s115_s0 = inlined_call_operand.hbm [shape: f32[8,256], index: 0, kind: input, shape index: {}]   ;;  %s116_s1 = inlined_call_operand.hbm [shape: f32[8,256], index: 1, kind: output, shape index: {}]  }
   0x1   :  { %7 = vsyncpa [#allocation4], 0  ;;  %s96_s6 = smov [#allocation2]  }
   0x2   :  { %s14_s7 = sshll.u32 %s96_s6, 4  ;;  %s15_s7 = int_to_ptr.vmem [resolvable:$true] %s14_s7 }
   0x3   :  { %s60_s8 = scalar_lea.vmem %s15_s7, 256  ;;  %p65_p1 = scmp.lt.s32.totalorder %s15_s7, %s15_s7 }
   0x4   :  { %p61_p0 = scmp.ne.s32.totalorder %s15_s7, %s60_s8  ;;  %p66_p2 = scmp.lt.s32.totalorder %s60_s8, %s60_s8 }
   0x6   :  { %p67_p3 = por %p66_p2, %p65_p1 }
   0x8   :  { %p68_p4 = pnand %p67_p3, %p61_p0 }
   0xa   :  { %71 = shalt.err (!%p68_p4)
}
   0xb   :  { %17 = dma.hbm_to_vmem [thread:$0]  %s115_s0, 256, %s15_s7, [#allocation3]  }
   0xc   :  { %92 = dma.done.wait [#allocation3], 256  }
   0xd   :  { %93 = vsyncadd [#allocation3], 4294967040  ;;  %v21_v0 = vld [vmem:[#allocation2] sm:$0xff]  ;;  %s97_s11 = smov 1   ;;  %v22_v1 = vld [vmem:[#allocation2 + $0x8] sm:$0xff]  ;;  %v27_v2 = vlaneseq  ;;  %s98_s12 = smov [#allocation5]  }
   0xe   :  { %23 = vrot.lane.b32.xlu0 %v21_v0, %s97_s11  ;;  %s40_s13 = sshll.u32 %s98_s12, 4  ;;  %s41_s13 = int_to_ptr.vmem [resolvable:$true] %s40_s13 }
   0xf   :  { %v28_v3 = vand.u32 127, %v27_v2  ;;  %s72_s0 = scalar_lea.vmem %s41_s13, 256  ;;  %p77_p6 = scmp.lt.s32.totalorder %s41_s13, %s41_s13 }
  0x10   :  { %p73_p5 = scmp.ne.s32.totalorder %s41_s13, %s72_s0  ;;  %p78_p7 = scmp.lt.s32.totalorder %s72_s0, %s72_s0 }
  0x11   :  { %vm29_vm0 = vcmp.lt.s32.totalorder %v28_v3, 1 }
  0x12   :  { %25 = vrot.lane.b32.xlu0 %v22_v1, %s97_s11  ;;  %p79_p8 = por %p78_p7, %p77_p6 }
  0x14   :  { %p80_p9 = pnand %p79_p8, %p73_p5 }
  0x80   :  { %v24_v4 = vpop.permute.xlu0 %23 }
  0x84   :  { %v26_v5 = vpop.permute.xlu0 %25 }
  0x85   :  { %v30_v6 = vsel %vm29_vm0, %v24_v4, %v26_v5  ;;  %v31_v7 = vsel %vm29_vm0, %v26_v5, %v24_v4 }
  0x86   :  { %32 = vst [vmem:[#allocation5] sm:$0xff] %v31_v7  ;;  %33 = vst [vmem:[#allocation5 + $0x8] sm:$0xff] %v30_v6 }
  0x87   :  { %83 = shalt.err (!%p80_p9)
}
  0x88   :  { %43 = dma.vmem_to_hbm [thread:$0]  %s41_s13, 256, %s116_s1, [#allocation4]  }
  0x89   :  { %94 = dma.done.wait [#allocation4], 256  }
  0x8a   :  { %95 = vsyncadd [#allocation4], 4294967040 }
  0x8b   :  { %47 = vsyncpa [#allocation3], 1 }
  0x8c   :  { %48 = vsyncpa [#allocation4], 1 }

</bundles_post_ra>
